<compile_context>
chip_gen: v7x
topology: tpu7x:2x2x1
jax: 0.10.0
libtpu: 0.0.40
codegen_flags: <defaults>
</compile_context>

<pallas_src>
import jax
import jax.numpy as jnp
from jax.experimental import pallas as pl
from jax.experimental.pallas import tpu as pltpu

K_IN = 42          # 6 x 7 Connect-Four board
K_PAD = 128        # lane-dense padded feature width
HIDDEN = 256


def _round_up(n, m):
    return ((n + m - 1) // m) * m


def _mlp_kernel(x_ref, w1_ref, b1_ref, w2_ref, b2_ref, w3_ref, b3_ref, o_ref):
    # x_ref : (TM, 128) bf16      w1 : (128, 256) bf16   b1 : (1, 256) f32
    # w2    : (256, 256) bf16     b2 : (1, 256)  f32
    # w3    : (256, 1)   bf16     b3 : SMEM (1,) f32     o  : (TM, 1) f32
    x = x_ref[...]                                            # bf16

    h1 = jnp.dot(x, w1_ref[...], preferred_element_type=jnp.float32)
    h1 = jnp.maximum(h1 + b1_ref[...], 0.0)                   # f32 VPU

    h2 = jnp.dot(h1.astype(jnp.bfloat16), w2_ref[...],
                 preferred_element_type=jnp.float32)
    h2 = jnp.maximum(h2 + b2_ref[...], 0.0)                   # f32 VPU

    h3 = jnp.dot(h2.astype(jnp.bfloat16), w3_ref[...],
                 preferred_element_type=jnp.float32) + b3_ref[0]
    o_ref[...] = jnp.tanh(h3).astype(o_ref.dtype)             # f32 EUP


def fc_regression_forward(x, params, tile_m=1024):
    """x: (B, 6, 7) float32 board -> (B, 1) float32 winrate in [-1, 1]."""
    w1, b1, w2, b2, w3, b3 = params
    b = x.shape[0]
    x_flat = x.reshape(b, -1)                                 # (B, 42)

    # Pick a batch tile (multiple of 8) and pad B up to a multiple of it.
    tm = min(tile_m, _round_up(b, 8))
    b_pad = _round_up(b, tm)

    # Lane-dense, bf16, zero-padded input slab: (b_pad, 128).
    x_pad = jnp.pad(x_flat.astype(jnp.bfloat16),
                    ((0, b_pad - b), (0, K_PAD - K_IN)))

    grid = (b_pad // tm,)

    out = pl.pallas_call(
        _mlp_kernel,
        out_shape=jax.ShapeDtypeStruct((b_pad, 1), jnp.float32),
        grid=grid,
        in_specs=[
            pl.BlockSpec((tm, K_PAD), lambda i: (i, 0)),            # x tile
            pl.BlockSpec((K_PAD, HIDDEN), lambda i: (0, 0)),        # w1 (resident)
            pl.BlockSpec((1, HIDDEN), lambda i: (0, 0)),            # b1
            pl.BlockSpec((HIDDEN, HIDDEN), lambda i: (0, 0)),       # w2
            pl.BlockSpec((1, HIDDEN), lambda i: (0, 0)),            # b2
            pl.BlockSpec((HIDDEN, 1), lambda i: (0, 0)),            # w3
            pl.BlockSpec(memory_space=pltpu.MemorySpace.SMEM),      # b3 scalar
        ],
        out_specs=pl.BlockSpec((tm, 1), lambda i: (i, 0)),
        compiler_params=pltpu.CompilerParams(
            dimension_semantics=("parallel",)),
    )(x_pad, w1, b1, w2, b2, w3, b3)

    return out[:b]


def init_params(key):
    """nn.Linear-style init (uniform +-1/sqrt(fan_in)); weights stored bf16,
    w1 zero-padded along fan_in from 42 -> 128 rows, biases kept f32."""
    ks = jax.random.split(key, 6)

    def linear(kw, kb, fan_in, fan_out, pad_in=None):
        bound = 1.0 / jnp.sqrt(jnp.float32(fan_in))
        w = jax.random.uniform(kw, (fan_in, fan_out), jnp.float32, -bound, bound)
        bvec = jax.random.uniform(kb, (1, fan_out), jnp.float32, -bound, bound)
        if pad_in is not None and pad_in > fan_in:
            w = jnp.pad(w, ((0, pad_in - fan_in), (0, 0)))
        return w.astype(jnp.bfloat16), bvec

    w1, b1 = linear(ks[0], ks[1], K_IN, HIDDEN, pad_in=K_PAD)
    w2, b2 = linear(ks[2], ks[3], HIDDEN, HIDDEN)
    w3, b3 = linear(ks[4], ks[5], HIDDEN, 1)
    b3 = b3.reshape((1,))                                     # SMEM scalar
    return (w1, b1, w2, b2, w3, b3)


def reference_forward(x, params):
    """Pure-JAX reference with the same bf16-operand / f32-accumulate math."""
    w1, b1, w2, b2, w3, b3 = params
    f32 = jnp.float32
    h = x.reshape(x.shape[0], -1).astype(jnp.bfloat16).astype(f32)
    h = jnp.pad(h, ((0, 0), (0, K_PAD - K_IN)))
    h = jax.nn.relu(h @ w1.astype(f32) + b1)
    h = jax.nn.relu(h.astype(jnp.bfloat16).astype(f32) @ w2.astype(f32) + b2)
    out = h.astype(jnp.bfloat16).astype(f32) @ w3.astype(f32) + b3.reshape(1, 1)
    return jnp.tanh(out)


if __name__ == "__main__":
    key = jax.random.PRNGKey(0)
    k_param, k_x = jax.random.split(key)

    params = init_params(k_param)
    # Connect-Four board: batch=2, 6 rows x 7 cols = 42 features
    x = jax.random.normal(k_x, (2, 6, 7), jnp.float32)

    out = fc_regression_forward(x, params)
    jax.block_until_ready(out)

    ref = reference_forward(x, params)
    assert out.shape == (2, 1)
    assert jnp.allclose(out, ref, atol=1e-2, rtol=1e-2), (out, ref)
    print("KERNEL_OK")
</pallas_src>

<mosaic_0001>
module attributes {stable_mosaic.version = 11 : i64} {
  func.func @_mlp_kernel(%arg0: i32, %arg1: memref<8x128xbf16, #tpu.memory_space<vmem>>, %arg2: memref<128x256xbf16, #tpu.memory_space<vmem>>, %arg3: memref<1x256xf32, #tpu.memory_space<vmem>>, %arg4: memref<256x256xbf16, #tpu.memory_space<vmem>>, %arg5: memref<1x256xf32, #tpu.memory_space<vmem>>, %arg6: memref<256x1xbf16, #tpu.memory_space<vmem>>, %arg7: memref<1xf32, #tpu.memory_space<smem>>, %arg8: memref<8x1xf32, #tpu.memory_space<vmem>>) attributes {dimension_semantics = [#tpu.dimension_semantics<parallel>], iteration_bounds = array<i64: 1>, scalar_prefetch = 0 : i64, scratch_operands = 0 : i64, tpu.core_type = #tpu.core_type<tc>, window_params = [{transform_indices = @transform_0, window_bounds = array<i64: 8, 128>}, {pipeline_mode = #tpu.pipeline_mode<synchronous>, transform_indices = @transform_1, window_bounds = array<i64: 128, 256>}, {pipeline_mode = #tpu.pipeline_mode<synchronous>, transform_indices = @transform_2, window_bounds = array<i64: 1, 256>}, {pipeline_mode = #tpu.pipeline_mode<synchronous>, transform_indices = @transform_3, window_bounds = array<i64: 256, 256>}, {pipeline_mode = #tpu.pipeline_mode<synchronous>, transform_indices = @transform_4, window_bounds = array<i64: 1, 256>}, {pipeline_mode = #tpu.pipeline_mode<synchronous>, transform_indices = @transform_5, window_bounds = array<i64: 256, 1>}, {transform_indices = @transform_6, window_bounds = array<i64: 1>}, {transform_indices = @transform_7, window_bounds = array<i64: 8, 1>}]} {
    %c0 = arith.constant 0 : index
    %c0_0 = arith.constant 0 : index
    %0 = vector.load %arg1[%c0, %c0_0] : memref<8x128xbf16, #tpu.memory_space<vmem>>, vector<8x128xbf16>
    %c0_1 = arith.constant 0 : index
    %c0_2 = arith.constant 0 : index
    %1 = vector.load %arg2[%c0_1, %c0_2] : memref<128x256xbf16, #tpu.memory_space<vmem>>, vector<128x256xbf16>
    %cst = arith.constant dense<0.000000e+00> : vector<8x256xf32>
    %2 = tpu.matmul %0, %1, %cst {dimension_numbers = #tpu.dot_dimension_numbers<[1], [0], [0], [1], [0, 0, 1, 1], [], []>} : vector<8x128xbf16>, vector<128x256xbf16>, vector<8x256xf32> -> vector<8x256xf32>
    %c0_3 = arith.constant 0 : index
    %c0_4 = arith.constant 0 : index
    %3 = vector.load %arg3[%c0_3, %c0_4] : memref<1x256xf32, #tpu.memory_space<vmem>>, vector<1x256xf32>
    %4 = vector.broadcast %3 : vector<1x256xf32> to vector<8x256xf32>
    %5 = arith.addf %2, %4 : vector<8x256xf32>
    %cst_5 = arith.constant 0.000000e+00 : f32
    %6 = vector.broadcast %cst_5 : f32 to vector<8x256xf32>
    %7 = arith.maximumf %5, %6 : vector<8x256xf32>
    %8 = arith.truncf %7 : vector<8x256xf32> to vector<8x256xbf16>
    %c0_6 = arith.constant 0 : index
    %c0_7 = arith.constant 0 : index
    %9 = vector.load %arg4[%c0_6, %c0_7] : memref<256x256xbf16, #tpu.memory_space<vmem>>, vector<256x256xbf16>
    %cst_8 = arith.constant dense<0.000000e+00> : vector<8x256xf32>
    %10 = tpu.matmul %8, %9, %cst_8 {dimension_numbers = #tpu.dot_dimension_numbers<[1], [0], [0], [1], [0, 0, 1, 1], [], []>} : vector<8x256xbf16>, vector<256x256xbf16>, vector<8x256xf32> -> vector<8x256xf32>
    %c0_9 = arith.constant 0 : index
    %c0_10 = arith.constant 0 : index
    %11 = vector.load %arg5[%c0_9, %c0_10] : memref<1x256xf32, #tpu.memory_space<vmem>>, vector<1x256xf32>
    %12 = vector.broadcast %11 : vector<1x256xf32> to vector<8x256xf32>
    %13 = arith.addf %10, %12 : vector<8x256xf32>
    %cst_11 = arith.constant 0.000000e+00 : f32
    %14 = vector.broadcast %cst_11 : f32 to vector<8x256xf32>
    %15 = arith.maximumf %13, %14 : vector<8x256xf32>
    %16 = arith.truncf %15 : vector<8x256xf32> to vector<8x256xbf16>
    %c0_12 = arith.constant 0 : index
    %c0_13 = arith.constant 0 : index
    %17 = vector.load %arg6[%c0_12, %c0_13] : memref<256x1xbf16, #tpu.memory_space<vmem>>, vector<256x1xbf16>
    %cst_14 = arith.constant dense<0.000000e+00> : vector<8x1xf32>
    %18 = tpu.matmul %16, %17, %cst_14 {dimension_numbers = #tpu.dot_dimension_numbers<[1], [0], [0], [1], [0, 0, 1, 1], [], []>} : vector<8x256xbf16>, vector<256x1xbf16>, vector<8x1xf32> -> vector<8x1xf32>
    %c0_15 = arith.constant 0 : index
    %19 = memref.load %arg7[%c0_15] : memref<1xf32, #tpu.memory_space<smem>>
    %20 = vector.broadcast %19 : f32 to vector<8x1xf32>
    %21 = arith.addf %18, %20 : vector<8x1xf32>
    %22 = math.tanh %21 : vector<8x1xf32>
    %c0_16 = arith.constant 0 : index
    %c0_17 = arith.constant 0 : index
    %23 = vector.load %arg8[%c0_16, %c0_17] : memref<8x1xf32, #tpu.memory_space<vmem>>, vector<8x1xf32>
    tpu.vector_store %arg8[%c0_16, %c0_17], %22 {strides = array<i32>} : memref<8x1xf32, #tpu.memory_space<vmem>>, vector<8x1xf32>,
    return
  }
  func.func @transform_0(%arg0: i32) -> (i32, i32) {
    %c0_i32 = arith.constant 0 : i32
    %c0_i32_0 = arith.constant 0 : i32
    return %arg0, %c0_i32 : i32, i32
  }
  func.func @transform_1(%arg0: i32) -> (i32, i32) {
    %c0_i32 = arith.constant 0 : i32
    %c0_i32_0 = arith.constant 0 : i32
    %c0_i32_1 = arith.constant 0 : i32
    return %c0_i32, %c0_i32_0 : i32, i32
  }
  func.func @transform_2(%arg0: i32) -> (i32, i32) {
    %c0_i32 = arith.constant 0 : i32
    %c0_i32_0 = arith.constant 0 : i32
    %c0_i32_1 = arith.constant 0 : i32
    return %c0_i32, %c0_i32_0 : i32, i32
  }
  func.func @transform_3(%arg0: i32) -> (i32, i32) {
    %c0_i32 = arith.constant 0 : i32
    %c0_i32_0 = arith.constant 0 : i32
    %c0_i32_1 = arith.constant 0 : i32
    return %c0_i32, %c0_i32_0 : i32, i32
  }
  func.func @transform_4(%arg0: i32) -> (i32, i32) {
    %c0_i32 = arith.constant 0 : i32
    %c0_i32_0 = arith.constant 0 : i32
    %c0_i32_1 = arith.constant 0 : i32
    return %c0_i32, %c0_i32_0 : i32, i32
  }
  func.func @transform_5(%arg0: i32) -> (i32, i32) {
    %c0_i32 = arith.constant 0 : i32
    %c0_i32_0 = arith.constant 0 : i32
    %c0_i32_1 = arith.constant 0 : i32
    return %c0_i32, %c0_i32_0 : i32, i32
  }
  func.func @transform_6(%arg0: i32) -> i32 {
    %c0_i32 = arith.constant 0 : i32
    %c0_i32_0 = arith.constant 0 : i32
    return %c0_i32 : i32
  }
  func.func @transform_7(%arg0: i32) -> (i32, i32) {
    %c0_i32 = arith.constant 0 : i32
    %c0_i32_0 = arith.constant 0 : i32
    return %arg0, %c0_i32 : i32, i32
  }
}

</mosaic_0001>

<bundles_post_ra>
// kernel: tpu_custom_call.1
= control target key start
LH: loop header
LB: loop body
LE: loop exit
PB: predicated region body
PF: predicated region fallthrough
CT: control target
= control target key end

     0   :  { %13 = vsyncpa [#allocation4], 0  ;;  %s827_s24 = smov [#allocation3]   ;;  %s994_s0 = inlined_call_operand.vmem [shape: bf16[8,128], index: 0, kind: input, shape index: {}]   ;;  %s995_s1 = inlined_call_operand.vmem [shape: bf16[128,256], index: 1, kind: input, shape index: {}]   ;;  %s996_s2 = inlined_call_operand.vmem [shape: f32[1,256], index: 2, kind: input, shape index: {}]   ;;  %s997_s3 = inlined_call_operand.hbm [shape: bf16[256,256], index: 3, kind: input, shape index: {}]   ;;  %s998_s4 = inlined_call_operand.vmem [shape: f32[1,256], index: 4, kind: input, shape index: {}]   ;;  %s999_s5 = inlined_call_operand.vmem [shape: bf16[256,1], index: 5, kind: input, shape index: {}]   ;;  %s1000_s6 = inlined_call_operand.<no memory space> [shape: f32[1], index: 6, kind: input, shape index: {}]   ;;  %s1001_s7 = inlined_call_operand.vmem [shape: f32[8,1], index: 7, kind: output, shape index: {}]  }
   0x1   :  { %s25_s25 = sshll.u32 %s827_s24, 4  ;;  %s803_s28 = scalar_lea.hbm %s997_s3, 4096  ;;  %s26_s25 = int_to_ptr.vmem [resolvable:$true] %s25_s25 }
   0x2   :  { %p804_p0 = scmp.ne.s32.totalorder %s997_s3, %s803_s28  ;;  %p807_p1 = scmp.lt.u32.totalorder %s803_s28, %s997_s3 }
   0x4   :  { %p809_p2 = pnand %p807_p1, %p804_p0 }
   0x6   :  { %812 = shalt.err (!%p809_p2)
}
   0x7   :  { %s813_s10 = scalar_lea.vmem %s26_s25, 4096  ;;  %p818_p4 = scmp.lt.s32.totalorder %s26_s25, %s26_s25 }
   0x8   :  { %p814_p3 = scmp.ne.s32.totalorder %s26_s25, %s813_s10  ;;  %p819_p5 = scmp.lt.s32.totalorder %s813_s10, %s813_s10 }
   0xa   :  { %p820_p6 = por %p819_p5, %p818_p4 }
   0xc   :  { %p821_p7 = pnand %p820_p6, %p814_p3 }
   0xe   :  { %824 = shalt.err (!%p821_p7)
}
   0xf   :  { %s828_s11 = smov 128   ;;  %s829_s12 = smov 8  }
  0x10   :  { %31 = dma.hbm_to_vmem [thread:$0]  %s997_s3, 4096, %s26_s25, [#allocation4], %s828_s11, %s828_s11, %s829_s12  }
  0x11   :  { %825 = dma.done.wait [#allocation4], 4096  }
  0x12   :  { %826 = vsyncadd [#allocation4], 4294963200  ;;  %v830_v0 = vmov 0   ;;  %v713_v1 = vld [vmem:[%s995_s1 + $0x4] ss:$8 sps:$4 sm:$0xff]   ;;  %v789_v54 = vld [vmem:[%s999_s5 + $0x50] sm:$0xff]   ;;  %v61_v62 = vlaneseq }
  0x13   :  { %183 = vmatprep.mubr.bf16.mxu0 %v830_v0  ;;  %v715_v2 = vld [vmem:[%s995_s1] ss:$8 sps:$4 sm:$0xff]   ;;  %151 = vmatprep.subr.bf16.mxu0 %v713_v1  ;;  %v716_v3 = vld [vmem:[%s995_s1 + $0x14] ss:$8 sps:$4 sm:$0xff]   ;;  %v718_v4 = vld [vmem:[%s995_s1 + $0x10] ss:$8 sps:$4 sm:$0xff]  }
  0x14   :  { %152 = vmatpush1.bf16.msra.mxu0 %v715_v2  ;;  %v719_v5 = vld [vmem:[%s995_s1 + $0x24] ss:$8 sps:$4 sm:$0xff]   ;;  %v721_v6 = vld [vmem:[%s995_s1 + $0x20] ss:$8 sps:$4 sm:$0xff]   ;;  %v722_v7 = vld [vmem:[%s995_s1 + $0x34] ss:$8 sps:$4 sm:$0xff]  }
  0x15   :  { %153 = vmatprep.subr.bf16.mxu0 %v716_v3  ;;  %v724_v8 = vld [vmem:[%s995_s1 + $0x30] ss:$8 sps:$4 sm:$0xff]   ;;  %v725_v9 = vld [vmem:[%s995_s1 + $0x44] ss:$8 sps:$4 sm:$0xff]   ;;  %v739_v11 = vld [vmem:[#allocation3] ss:$8 sps:$4 sm:$0xff]  }
  0x16   :  { %v737_v10 = vld [vmem:[#allocation3 + $0x4] ss:$8 sps:$4 sm:$0xff]   ;;  %v740_v12 = vld [vmem:[#allocation3 + $0x14] ss:$8 sps:$4 sm:$0xff]   ;;  %v727_v13 = vld [vmem:[%s995_s1 + $0x40] ss:$8 sps:$4 sm:$0xff]  }
  0x17   :  { %400 = vmatprep.subr.bf16.mxu1 %v737_v10  ;;  %v742_v14 = vld [vmem:[#allocation3 + $0x10] ss:$8 sps:$4 sm:$0xff]   ;;  %v743_v15 = vld [vmem:[#allocation3 + $0x24] ss:$8 sps:$4 sm:$0xff]   ;;  %v728_v16 = vld [vmem:[%s995_s1 + $0x54] ss:$8 sps:$4 sm:$0xff]  }
  0x18   :  { %154 = vmatpush1.bf16.msra.mxu0 %v718_v4  ;;  %401 = vmatpush1.bf16.msra.mxu1 %v739_v11  ;;  %v730_v17 = vld [vmem:[%s995_s1 + $0x50] ss:$8 sps:$4 sm:$0xff]   ;;  %v745_v18 = vld [vmem:[#allocation3 + $0x20] ss:$8 sps:$4 sm:$0xff]   ;;  %v746_v19 = vld [vmem:[#allocation3 + $0x34] ss:$8 sps:$4 sm:$0xff]  }
  0x19   :  { %155 = vmatprep.subr.bf16.mxu0 %v719_v5  ;;  %402 = vmatprep.subr.bf16.mxu1 %v740_v12  ;;  %v731_v20 = vld [vmem:[%s995_s1 + $0x64] ss:$8 sps:$4 sm:$0xff]   ;;  %v733_v21 = vld [vmem:[%s995_s1 + $0x60] ss:$8 sps:$4 sm:$0xff]   ;;  %v748_v22 = vld [vmem:[#allocation3 + $0x30] ss:$8 sps:$4 sm:$0xff]  }
  0x1a   :  { %v749_v23 = vld [vmem:[#allocation3 + $0x44] ss:$8 sps:$4 sm:$0xff]   ;;  %v734_v24 = vld [vmem:[%s995_s1 + $0x74] ss:$8 sps:$4 sm:$0xff]   ;;  %v736_v25 = vld [vmem:[%s995_s1 + $0x70] ss:$8 sps:$4 sm:$0xff]  }
  0x1b   :  { %v751_v26 = vld [vmem:[#allocation3 + $0x40] ss:$8 sps:$4 sm:$0xff]   ;;  %v752_v27 = vld [vmem:[#allocation3 + $0x54] ss:$8 sps:$4 sm:$0xff]   ;;  %v754_v29 = vld [vmem:[#allocation3 + $0x50] ss:$8 sps:$4 sm:$0xff]  }
  0x1c   :  { %156 = vmatpush1.bf16.msra.mxu0 %v721_v6  ;;  %403 = vmatpush1.bf16.msra.mxu1 %v742_v14  ;;  %v42_v28 = vld [vmem:[%s994_s0] sm:$0xf]  ;;  %v755_v30 = vld [vmem:[#allocation3 + $0x64] ss:$8 sps:$4 sm:$0xff]   ;;  %v758_v32 = vld [vmem:[#allocation3 + $0x74] ss:$8 sps:$4 sm:$0xff]  }
  0x1d   :  { %157 = vmatprep.subr.bf16.mxu0 %v722_v7  ;;  %404 = vmatprep.subr.bf16.mxu1 %v743_v15  ;;  %v757_v31 = vld [vmem:[#allocation3 + $0x60] ss:$8 sps:$4 sm:$0xff]   ;;  %v760_v33 = vld [vmem:[#allocation3 + $0x70] ss:$8 sps:$4 sm:$0xff]   ;;  %v761_v34 = vld [vmem:[#allocation3 + $0x84] ss:$8 sps:$4 sm:$0xff]  }
  0x1e   :  { %v763_v35 = vld [vmem:[#allocation3 + $0x80] ss:$8 sps:$4 sm:$0xff]   ;;  %v764_v36 = vld [vmem:[#allocation3 + $0x94] ss:$8 sps:$4 sm:$0xff]   ;;  %v766_v37 = vld [vmem:[#allocation3 + $0x90] ss:$8 sps:$4 sm:$0xff]  }
  0x1f   :  { %v767_v38 = vld [vmem:[#allocation3 + $0xa4] ss:$8 sps:$4 sm:$0xff]   ;;  %v769_v39 = vld [vmem:[#allocation3 + $0xa0] ss:$8 sps:$4 sm:$0xff]   ;;  %v770_v40 = vld [vmem:[#allocation3 + $0xb4] ss:$8 sps:$4 sm:$0xff]  }
  0x20   :  { %158 = vmatpush1.bf16.msra.mxu0 %v724_v8  ;;  %405 = vmatpush1.bf16.msra.mxu1 %v745_v18  ;;  %v772_v41 = vld [vmem:[#allocation3 + $0xb0] ss:$8 sps:$4 sm:$0xff]   ;;  %v773_v42 = vld [vmem:[#allocation3 + $0xc4] ss:$8 sps:$4 sm:$0xff]   ;;  %v775_v43 = vld [vmem:[#allocation3 + $0xc0] ss:$8 sps:$4 sm:$0xff]  }
  0x21   :  { %159 = vmatprep.subr.bf16.mxu0 %v725_v9  ;;  %406 = vmatprep.subr.bf16.mxu1 %v746_v19  ;;  %v776_v44 = vld [vmem:[#allocation3 + $0xd4] ss:$8 sps:$4 sm:$0xff]   ;;  %v778_v45 = vld [vmem:[#allocation3 + $0xd0] ss:$8 sps:$4 sm:$0xff]   ;;  %v779_v46 = vld [vmem:[#allocation3 + $0xe4] ss:$8 sps:$4 sm:$0xff]  }
  0x22   :  { %v781_v47 = vld [vmem:[#allocation3 + $0xe0] ss:$8 sps:$4 sm:$0xff]   ;;  %v782_v48 = vld [vmem:[#allocation3 + $0xf4] ss:$8 sps:$4 sm:$0xff]   ;;  %v784_v49 = vld [vmem:[#allocation3 + $0xf0] ss:$8 sps:$4 sm:$0xff]  }
  0x23   :  { %v785_v50 = vld [vmem:[%s999_s5 + $0x40] sm:$0xff]   ;;  %v787_v52 = vld [vmem:[%s999_s5 + $0x48] sm:$0xff]   ;;  %v790_v55 = vld [vmem:[%s999_s5 + $0x10] sm:$0xff]   ;;  %v62_v63 = vshrl.u32 %v61_v62, 7  ;;  %vm616_vm0 = vcmask 7168  }
  0x24   :  { %160 = vmatpush1.bf16.msra.mxu0 %v727_v13  ;;  %407 = vmatpush1.bf16.msra.mxu1 %v748_v22  ;;  %v786_v51 = vld [vmem:[%s999_s5] sm:$0xff]   ;;  %v788_v53 = vld [vmem:[%s999_s5 + $0x8] sm:$0xff]   ;;  %v791_v56 = vld [vmem:[%s999_s5 + $0x58] sm:$0xff]  }
  0x25   :  { %161 = vmatprep.subr.bf16.mxu0 %v728_v16  ;;  %408 = vmatprep.subr.bf16.mxu1 %v749_v23  ;;  %v792_v57 = vld [vmem:[%s999_s5 + $0x18] sm:$0xff]   ;;  %v793_v58 = vld [vmem:[%s999_s5 + $0x60] sm:$0xff]   ;;  %v795_v60 = vld [vmem:[%s999_s5 + $0x68] sm:$0xff]   ;;  %v63_v0 = vsub.s32 0, %v62_v63  ;;  %v67_v2 = vsub.s32 1, %v62_v63 }
  0x26   :  { %v794_v59 = vld [vmem:[%s999_s5 + $0x20] sm:$0xff]   ;;  %v796_v61 = vld [vmem:[%s999_s5 + $0x28] sm:$0xff]   ;;  %v797_v15 = vld [vmem:[%s999_s5 + $0x70] sm:$0xff]  }
  0x27   :  { %v59_v1 = vld [vmem:[%s996_s2] sm:$0x3]  ;;  %v798_v16 = vld [vmem:[%s999_s5 + $0x30] sm:$0xff]   ;;  %v800_v18 = vld [vmem:[%s999_s5 + $0x38] sm:$0xff]  }
  0x28   :  { %162 = vmatpush1.bf16.msra.mxu0 %v730_v17  ;;  %409 = vmatpush1.bf16.msra.mxu1 %v751_v26  ;;  %v64_v3 = vrot.slane %v59_v1, %v63_v0  ;;  %v68_v4 = vrot.slane %v59_v1, %v67_v2  ;;  %v799_v17 = vld [vmem:[%s999_s5 + $0x78] sm:$0xff]   ;;  %v228_v19 = vld [vmem:[%s998_s4] sm:$0x3] }
  0x29   :  { %163 = vmatprep.subr.bf16.mxu0 %v731_v20  ;;  %410 = vmatprep.subr.bf16.mxu1 %v752_v27  ;;  %v233_v20 = vrot.slane %v228_v19, %v63_v0 }
  0x2c   :  { %164 = vmatpush1.bf16.msra.mxu0 %v733_v21  ;;  %411 = vmatpush1.bf16.msra.mxu1 %v754_v29  ;;  %v237_v21 = vrot.slane %v228_v19, %v67_v2 }
  0x2d   :  { %165 = vmatprep.subr.bf16.mxu0 %v734_v24  ;;  %412 = vmatprep.subr.bf16.mxu1 %v755_v30 }
  0x30   :  { %166 = vmatpush1.bf16.msra.mxu0 %v736_v25  ;;  %413 = vmatpush1.bf16.msra.mxu1 %v757_v31 }
  0x31   :  { %414 = vmatprep.subr.bf16.mxu1 %v758_v32  ;;  %687 = vmatprep.subr.bf16.mxu0 %v785_v50 }
  0x33   :  { %184 = vmatmul.mubr.bf16.vlgmr.msra.gmra.mrb[0].mxu0 %v42_v28 }
  0x34   :  { %415 = vmatpush1.bf16.msra.mxu1 %v760_v33  ;;  %688 = vmatpush3.bf16.msra.mxu0 %v786_v51  ;;  %v478_v33 = vstv %s1000_s6 }
  0x35   :  { %416 = vmatprep.subr.bf16.mxu1 %v761_v34  ;;  %689 = vmatprep.subr.bf16.mxu0 %v787_v52 }
  0x38   :  { %417 = vmatpush1.bf16.msra.mxu1 %v763_v35  ;;  %690 = vmatpush3.bf16.msra.mxu0 %v788_v53 }
  0x39   :  { %418 = vmatprep.subr.bf16.mxu1 %v764_v36  ;;  %691 = vmatprep.subr.bf16.mxu0 %v789_v54 }
  0x3c   :  { %419 = vmatpush1.bf16.msra.mxu1 %v766_v37  ;;  %692 = vmatpush3.bf16.msra.mxu0 %v790_v55 }
  0x3d   :  { %420 = vmatprep.subr.bf16.mxu1 %v767_v38  ;;  %693 = vmatprep.subr.bf16.mxu0 %v791_v56 }
  0x40   :  { %421 = vmatpush1.bf16.msra.mxu1 %v769_v39  ;;  %694 = vmatpush3.bf16.msra.mxu0 %v792_v57 }
  0x41   :  { %422 = vmatprep.subr.bf16.mxu1 %v770_v40  ;;  %695 = vmatprep.subr.bf16.mxu0 %v793_v58 }
  0x44   :  { %423 = vmatpush1.bf16.msra.mxu1 %v772_v41  ;;  %696 = vmatpush3.bf16.msra.mxu0 %v794_v59 }
  0x45   :  { %424 = vmatprep.subr.bf16.mxu1 %v773_v42  ;;  %697 = vmatprep.subr.bf16.mxu0 %v795_v60 }
  0x48   :  { %425 = vmatpush1.bf16.msra.mxu1 %v775_v43  ;;  %698 = vmatpush3.bf16.msra.mxu0 %v796_v61 }
  0x49   :  { %426 = vmatprep.subr.bf16.mxu1 %v776_v44  ;;  %699 = vmatprep.subr.bf16.mxu0 %v797_v15 }
  0x4c   :  { %427 = vmatpush1.bf16.msra.mxu1 %v778_v45  ;;  %700 = vmatpush3.bf16.msra.mxu0 %v798_v16 }
  0x4d   :  { %428 = vmatprep.subr.bf16.mxu1 %v779_v46  ;;  %701 = vmatprep.subr.bf16.mxu0 %v799_v17 }
  0x50   :  { %429 = vmatpush1.bf16.msra.mxu1 %v781_v47  ;;  %702 = vmatpush3.bf16.msra.mxu0 %v800_v18 }
  0x51   :  { %430 = vmatprep.subr.bf16.mxu1 %v782_v48 }
  0x54   :  { %431 = vmatpush1.bf16.msra.mxu1 %v784_v49 }
 0x106   :  { %v185_v5 = vpop.f32.mrb[0].mxu0 }
 0x107   :  { %v186_v6 = vadd.f32 %v185_v5, %v64_v3  ;;  %v187_v7 = vpop.f32.mrb[1].mxu0 }
 0x108   :  { %v188_v8 = vadd.f32 %v187_v7, %v68_v4  ;;  %v189_v9 = vpop.f32.mrb[2].mxu0 }
 0x109   :  { %v192_v10 = vmax.f32 %v186_v6, 0.0  ;;  %v190_v11 = vpop.f32.mrb[3].mxu0 }
 0x10a   :  { %v193_v12 = vmax.f32 %v188_v8, 0.0 }
 0x10b   :  { %v194_v14 = vpack.c.bf16 %v192_v10, %v192_v10 }
 0x10c   :  { %v195_v13 = vpack.c.bf16 %v193_v12, %v193_v12 }
 0x10e   :  { %432 = vmatprep.mubr.bf16.mxu1 %v195_v13 }
 0x10f   :  { %433 = vmatmul.mubr.bf16.vlgmr.msra.gmra.mrb[0].mxu1 %v194_v14 }
 0x1e2   :  { %v434_v22 = vpop.f32.mrb[0].mxu1 }
 0x1e3   :  { %v435_v23 = vadd.f32 %v434_v22, %v233_v20  ;;  %v436_v24 = vpop.f32.mrb[1].mxu1 }
 0x1e4   :  { %v437_v25 = vadd.f32 %v436_v24, %v237_v21  ;;  %v438_v26 = vpop.f32.mrb[2].mxu1 }
 0x1e5   :  { %v441_v27 = vmax.f32 %v435_v23, 0.0  ;;  %v439_v28 = vpop.f32.mrb[3].mxu1 }
 0x1e6   :  { %v442_v29 = vmax.f32 %v437_v25, 0.0 }
 0x1e7   :  { %v443_v31 = vpack.c.bf16 %v441_v27, %v441_v27 }
 0x1e8   :  { %v444_v30 = vpack.c.bf16 %v442_v29, %v442_v29 }
 0x1ea   :  { %607 = vmatprep.mubr.bf16.mxu0 %v444_v30 }
 0x1eb   :  { %608 = vmatmul.mubr.bf16.vlgmr.msra.gmra.mrb[4].mxu0 %v443_v31 }
 0x2be   :  { %v703_v32 = vpop.f32.mrb[4].mxu0 }
 0x2bf   :  { %v704_v34 = vpop.f32.mrb[5].mxu0 }
 0x2c0   :  { %v705_v35 = vadd.f32 %v704_v34, %v703_v32  ;;  %v706_v36 = vpop.f32.mrb[6].mxu0 }
 0x2c1   :  { %v707_v37 = vpop.f32.mrb[7].mxu0 }
 0x2c2   :  { %v610_v38 = vadd.f32 %v705_v35, %v478_v33 }
 0x2c4   :  { %801 = vtanh.f32 %v610_v38 }
 0x2ce   :  { %v802_v39 = vpop.eup %801 }
 0x2cf   :  { %617 = vst.msk [vmem:[%s1001_s7] sm:$0xff] %vm616_vm0, %v802_v39 }
 0x2d0   :  { %622 = vsyncpa [#allocation4], 1 }

</bundles_post_ra>
